<compile_context>
chip_gen: v7x
topology: tpu7x:2x2x1
jax: 0.10.0
libtpu: 0.0.40
codegen_flags: <defaults>
</compile_context>

<pallas_src>
import math

import jax
import jax.numpy as jnp
from jax.experimental import pallas as pl
from jax.experimental.pallas import tpu as pltpu


# ----------------------------------------------------------------------------
# Pallas kernel: one-hot embedding matmuls + folded-BN first layer
#                -> (Linear + ReLU)*N -> padded output Linear
#                -> optional sigmoid / y_range rescale
# ----------------------------------------------------------------------------
def _make_kernel(vocab_sizes, n_hidden, y_range, compute_dtype):
    n_emb = len(vocab_sizes)

    def kernel(xcat_ref, xcont_ref, *rest):
        # rest layout:
        #   M_0 .. M_{E-1}        (vocab_i, H1)   embedding-folded first-layer mats
        #   W0_cont               (n_cont, H1)    BN-folded continuous rows of W0
        #   b0                    (1, H1)         BN-folded bias (f32)
        #   (W_j, b_j) j=1..      hidden Linear layers
        #   W_out_pad, b_out_pad  (H_last, 128), (1, 128)  lane-dense output layer
        #   [-1] out              (TB, 128)
        out_ref = rest[-1]
        p = rest[:-1]
        tb = xcat_ref.shape[0]

        xcat = xcat_ref[...]                                   # (TB, E) int32
        idx = 0

        # ---- first hidden layer: sum of embedding one-hot matmuls + cont matmul
        acc = None
        for i in range(n_emb):
            vocab = vocab_sizes[i]
            ids = xcat[:, i:i + 1]                             # (TB, 1) int32
            iota = jax.lax.broadcasted_iota(jnp.int32, (tb, vocab), 1)
            onehot = (ids == iota).astype(compute_dtype)       # (TB, vocab)
            m = p[idx][...]                                    # (vocab, H1)
            idx += 1
            part = jnp.dot(onehot, m, preferred_element_type=jnp.float32)
            acc = part if acc is None else acc + part

        w0c = p[idx][...]
        idx += 1
        xc = xcont_ref[...]                                    # (TB, n_cont)
        cont = jnp.dot(xc, w0c, preferred_element_type=jnp.float32)
        acc = cont if acc is None else acc + cont

        b0 = p[idx][...]                                       # (1, H1) f32
        idx += 1
        h = jnp.maximum(acc + b0, 0.0)                         # f32

        # ---- remaining hidden layers
        for _ in range(n_hidden - 1):
            w = p[idx][...]
            idx += 1
            b = p[idx][...]
            idx += 1
            h = jnp.maximum(
                jnp.dot(h.astype(compute_dtype), w,
                        preferred_element_type=jnp.float32) + b,
                0.0,
            )

        # ---- output layer (padded to lane-dense 128 columns)
        w_o = p[idx][...]
        idx += 1
        b_o = p[idx][...]
        idx += 1
        y = jnp.dot(h.astype(compute_dtype), w_o,
                    preferred_element_type=jnp.float32) + b_o

        if y_range is not None:
            lo, hi = y_range
            y = jax.nn.sigmoid(y) * (hi - lo) + lo

        out_ref[...] = y.astype(out_ref.dtype)

    return kernel


# ----------------------------------------------------------------------------
# Wrapper: parameter folding + batch tiling + pallas_call
# ----------------------------------------------------------------------------
def multi_input_nn_forward(x_cat, x_cont, params, *, y_range=None,
                           compute_dtype=jnp.bfloat16, batch_tile=128,
                           out_pad=128):
    """Forward pass of MultiInputNN (eval mode), fully fused in one Pallas call."""
    emb_tables = params["embeddings"]      # list of (vocab, emb_dim)
    bn_scale, bn_shift = params["bn"]      # (n_cont,), (n_cont,)
    hidden = params["hidden"]              # list of (W[in,out], b[out])
    w_out, b_out = params["output"]        # (H_last, 1), (1,)

    B = x_cat.shape[0]
    n_emb = len(emb_tables)
    emb_dims = [int(t.shape[1]) for t in emb_tables]
    vocabs = [int(t.shape[0]) for t in emb_tables]
    num_cat = sum(emb_dims)
    n_cont = int(x_cont.shape[1])
    assert n_emb > 0 and n_cont > 0 and len(hidden) >= 1

    w0, b0 = hidden[0]                     # (num_cat + n_cont, H1), (H1,)
    h1 = int(w0.shape[1])

    # --- fold eval-mode BatchNorm1d(x_cont) into the first Linear (pure algebra)
    w0_cont = w0[num_cat:, :]
    b0_f = (b0 + bn_shift @ w0_cont).reshape(1, -1).astype(jnp.float32)
    w0_cont_f = bn_scale[:, None] * w0_cont

    # --- fold each embedding table into the first Linear: one-hot @ (T_i @ W0_i)
    emb_mats = []
    off = 0
    for t, d in zip(emb_tables, emb_dims):
        emb_mats.append(jnp.dot(t, w0[off:off + d, :]))
        off += d

    # --- lane-dense output layer: pad the 1-wide Linear to out_pad columns
    h_last = int(w_out.shape[0])
    w_out_pad = jnp.zeros((h_last, out_pad), jnp.float32).at[:, :1].set(w_out)
    b_out_pad = jnp.zeros((1, out_pad), jnp.float32).at[:, 0].set(b_out)

    # --- flat parameter list (weights in compute_dtype, biases in f32)
    flat = [m.astype(compute_dtype) for m in emb_mats]
    flat.append(w0_cont_f.astype(compute_dtype))
    flat.append(b0_f)
    for w, b in hidden[1:]:
        flat.append(w.astype(compute_dtype))
        flat.append(b.reshape(1, -1).astype(jnp.float32))
    flat.append(w_out_pad.astype(compute_dtype))
    flat.append(b_out_pad)

    # --- batch padding to a multiple of the tile (handles ragged last tile)
    TB = int(batch_tile)
    B_pad = ((B + TB - 1) // TB) * TB
    if B_pad != B:
        x_cat = jnp.pad(x_cat, ((0, B_pad - B), (0, 0)))
        x_cont = jnp.pad(x_cont, ((0, B_pad - B), (0, 0)))
    x_cat_in = x_cat.astype(jnp.int32)
    x_cont_in = x_cont.astype(compute_dtype)

    grid = (B_pad // TB,)

    in_specs = [
        pl.BlockSpec((TB, n_emb), lambda i: (i, 0)),    # categorical ids tile
        pl.BlockSpec((TB, n_cont), lambda i: (i, 0)),   # continuous features tile
    ]
    # weights / biases: full-array blocks, VMEM-resident across the batch grid
    for a in flat:
        in_specs.append(pl.BlockSpec(tuple(a.shape), lambda i: (0, 0)))

    out_specs = pl.BlockSpec((TB, out_pad), lambda i: (i, 0))

    # --- advisory cost estimate for the XLA scheduler
    flops = 0
    for v in vocabs:
        flops += 2 * B_pad * v * h1
    flops += 2 * B_pad * n_cont * h1
    dims = [h1] + [int(w.shape[1]) for w, _ in hidden[1:]]
    for k in range(len(dims) - 1):
        flops += 2 * B_pad * dims[k] * dims[k + 1]
    flops += 2 * B_pad * dims[-1] * out_pad
    transcendentals = B_pad * out_pad if y_range is not None else 0
    bytes_accessed = (
        x_cat_in.size * 4
        + x_cont_in.size * x_cont_in.dtype.itemsize
        + sum(a.size * a.dtype.itemsize for a in flat)
        + B_pad * out_pad * 4
    )

    kernel = _make_kernel(vocabs, len(hidden), y_range, compute_dtype)

    out = pl.pallas_call(
        kernel,
        out_shape=jax.ShapeDtypeStruct((B_pad, out_pad), jnp.float32),
        grid=grid,
        in_specs=in_specs,
        out_specs=out_specs,
        compiler_params=pltpu.CompilerParams(
            dimension_semantics=("parallel",),          # megacore on v7x
            vmem_limit_bytes=32 * 1024 * 1024,          # safe on v5e/v6e/v7x
        ),
        cost_estimate=pl.CostEstimate(
            flops=flops,
            transcendentals=transcendentals,
            bytes_accessed=bytes_accessed,
        ),
    )(x_cat_in, x_cont_in, *flat)

    return out[:B, :1]


# ----------------------------------------------------------------------------
# Deterministic parameter construction (mirrors the module's __init__)
# ----------------------------------------------------------------------------
def build_params(key, emb_szs, n_cont, sizes):
    keys = jax.random.split(key, 2 + 2 * len(sizes) + 2 * len(emb_szs))
    ki = iter(range(len(keys)))

    # nn.Embedding + init_embeddings: uniform(-2/(emb_dim+1), 2/(emb_dim+1))
    embeddings = []
    for (vocab, dim) in emb_szs:
        val = 2.0 / (dim + 1)
        tbl = jax.random.uniform(
            keys[next(ki)], (vocab, dim), jnp.float32, minval=-val, maxval=val
        )
        embeddings.append(tbl)

    num_cat = sum(d for _, d in emb_szs)
    layer_sizes = [num_cat + n_cont] + list(sizes)

    # nn.Linear + kaiming_normal (fan_in, gain sqrt(2)); bias ~ U(-1/sqrt(fan_in), ..)
    hidden = []
    for i in range(len(layer_sizes) - 1):
        fan_in, fan_out = layer_sizes[i], layer_sizes[i + 1]
        w = jax.random.normal(keys[next(ki)], (fan_in, fan_out), jnp.float32) * math.sqrt(
            2.0 / fan_in
        )
        bound = 1.0 / math.sqrt(fan_in)
        b = jax.random.uniform(
            keys[next(ki)], (fan_out,), jnp.float32, minval=-bound, maxval=bound
        )
        hidden.append((w, b))

    # output Linear(sizes[-1], 1), kaiming_normal
    fan_in = layer_sizes[-1]
    w_out = jax.random.normal(keys[next(ki)], (fan_in, 1), jnp.float32) * math.sqrt(
        2.0 / fan_in
    )
    bound = 1.0 / math.sqrt(fan_in)
    b_out = jax.random.uniform(
        keys[next(ki)], (1,), jnp.float32, minval=-bound, maxval=bound
    )

    # BatchNorm1d(n_cont), eval mode, default stats: mean=0, var=1, gamma=1, beta=0
    eps = 1e-5
    bn_scale = jnp.full((n_cont,), 1.0 / math.sqrt(1.0 + eps), jnp.float32)
    bn_shift = jnp.zeros((n_cont,), jnp.float32)

    return {
        "embeddings": embeddings,
        "bn": (bn_scale, bn_shift),
        "hidden": hidden,
        "output": (w_out, b_out),
    }


# ----------------------------------------------------------------------------
# Pure-JAX reference (same eval semantics, module-shaped math, f32)
# ----------------------------------------------------------------------------
def reference_forward(x_cat, x_cont, params, *, y_range=None):
    emb_feats = [
        jnp.take(tbl, x_cat[:, i], axis=0) for i, tbl in enumerate(params["embeddings"])
    ]
    x_emb = jnp.concatenate(emb_feats, axis=1)
    bn_scale, bn_shift = params["bn"]
    x2 = x_cont * bn_scale[None, :] + bn_shift[None, :]
    x = jnp.concatenate([x_emb, x2], axis=1)
    for w, b in params["hidden"]:
        x = jnp.maximum(x @ w + b[None, :], 0.0)
    w_out, b_out = params["output"]
    x = x @ w_out + b_out[None, :]
    if y_range is not None:
        lo, hi = y_range
        x = jax.nn.sigmoid(x) * (hi - lo) + lo
    return x


if __name__ == "__main__":
    key = jax.random.PRNGKey(0)

    # Module config (small, consistent with the forward pass):
    emb_szs = [(10, 4), (8, 3)]     # -> num_categorical = 7
    n_cont = 5                      # -> input features = 12
    sizes = [32, 16]                # two hidden Linear layers
    y_range = (0.0, 5.0)
    B = 200                         # not a multiple of the 128-row batch tile
                                    # -> exercises grid + ragged-tile padding

    kp, kcat0, kcat1, kcont = jax.random.split(key, 4)
    params = build_params(kp, emb_szs, n_cont, sizes)

    x_cat = jnp.stack(
        [
            jax.random.randint(kcat0, (B,), 0, emb_szs[0][0]),
            jax.random.randint(kcat1, (B,), 0, emb_szs[1][0]),
        ],
        axis=1,
    ).astype(jnp.int32)                                          # (B, 2)
    x_cont = jax.random.normal(kcont, (B, n_cont), jnp.float32)  # (B, 5)

    ref = reference_forward(x_cat, x_cont, params, y_range=y_range)

    # f32 compute path: tight check against the module-shaped f32 reference
    out_f32 = multi_input_nn_forward(
        x_cat, x_cont, params, y_range=y_range, compute_dtype=jnp.float32
    )
    out_f32 = jax.block_until_ready(out_f32)
    assert out_f32.shape == (B, 1), out_f32.shape
    assert jnp.allclose(out_f32, ref, atol=1e-4, rtol=1e-4), (out_f32, ref)

    # bf16 matmul path (default): halves activation DMA / doubles MXU rate;
    # accumulation + elementwise math stays f32, tolerance relaxed to bf16 level.
    out_bf16 = multi_input_nn_forward(
        x_cat, x_cont, params, y_range=y_range, compute_dtype=jnp.bfloat16
    )
    out_bf16 = jax.block_until_ready(out_bf16)
    assert out_bf16.shape == (B, 1), out_bf16.shape
    assert jnp.allclose(out_bf16, ref, atol=5e-2, rtol=5e-2), (out_bf16, ref)

    print("KERNEL_OK")
</pallas_src>

<mosaic_0001>
module attributes {stable_mosaic.version = 11 : i64} {
  func.func @kernel(%arg0: i32, %arg1: memref<128x2xi32, #tpu.memory_space<vmem>>, %arg2: memref<128x5xf32, #tpu.memory_space<vmem>>, %arg3: memref<10x32xf32, #tpu.memory_space<vmem>>, %arg4: memref<8x32xf32, #tpu.memory_space<vmem>>, %arg5: memref<5x32xf32, #tpu.memory_space<vmem>>, %arg6: memref<1x32xf32, #tpu.memory_space<vmem>>, %arg7: memref<32x16xf32, #tpu.memory_space<vmem>>, %arg8: memref<1x16xf32, #tpu.memory_space<vmem>>, %arg9: memref<16x128xf32, #tpu.memory_space<vmem>>, %arg10: memref<1x128xf32, #tpu.memory_space<vmem>>, %arg11: memref<128x128xf32, #tpu.memory_space<vmem>>) attributes {dimension_semantics = [#tpu.dimension_semantics<parallel>], iteration_bounds = array<i64: 2>, scalar_prefetch = 0 : i64, scratch_operands = 0 : i64, tpu.core_type = #tpu.core_type<tc>, window_params = [{transform_indices = @transform_0, window_bounds = array<i64: 128, 2>}, {transform_indices = @transform_1, window_bounds = array<i64: 128, 5>}, {pipeline_mode = #tpu.pipeline_mode<synchronous>, transform_indices = @transform_2, window_bounds = array<i64: 10, 32>}, {pipeline_mode = #tpu.pipeline_mode<synchronous>, transform_indices = @transform_3, window_bounds = array<i64: 8, 32>}, {pipeline_mode = #tpu.pipeline_mode<synchronous>, transform_indices = @transform_4, window_bounds = array<i64: 5, 32>}, {pipeline_mode = #tpu.pipeline_mode<synchronous>, transform_indices = @transform_5, window_bounds = array<i64: 1, 32>}, {pipeline_mode = #tpu.pipeline_mode<synchronous>, transform_indices = @transform_6, window_bounds = array<i64: 32, 16>}, {pipeline_mode = #tpu.pipeline_mode<synchronous>, transform_indices = @transform_7, window_bounds = array<i64: 1, 16>}, {pipeline_mode = #tpu.pipeline_mode<synchronous>, transform_indices = @transform_8, window_bounds = array<i64: 16, 128>}, {pipeline_mode = #tpu.pipeline_mode<synchronous>, transform_indices = @transform_9, window_bounds = array<i64: 1, 128>}, {transform_indices = @transform_10, window_bounds = array<i64: 128, 128>}]} {
    %c0 = arith.constant 0 : index
    %c0_0 = arith.constant 0 : index
    %0 = vector.load %arg1[%c0, %c0_0] : memref<128x2xi32, #tpu.memory_space<vmem>>, vector<128x2xi32>
    %1 = vector.extract_strided_slice %0 {offsets = [0, 0], sizes = [128, 1], strides = [1, 1]} : vector<128x2xi32> to vector<128x1xi32>
    %2 = tpu.iota {dimensions = array<i32: 1>} : vector<128x10xi32>
    %3 = vector.broadcast %1 : vector<128x1xi32> to vector<128x10xi32>
    %4 = arith.cmpi eq, %3, %2 : vector<128x10xi32>
    %5 = arith.extui %4 : vector<128x10xi1> to vector<128x10xi32>
    %6 = arith.sitofp %5 : vector<128x10xi32> to vector<128x10xf32>
    %c0_1 = arith.constant 0 : index
    %c0_2 = arith.constant 0 : index
    %7 = vector.load %arg3[%c0_1, %c0_2] : memref<10x32xf32, #tpu.memory_space<vmem>>, vector<10x32xf32>
    %cst = arith.constant dense<0.000000e+00> : vector<128x32xf32>
    %8 = tpu.matmul %6, %7, %cst {dimension_numbers = #tpu.dot_dimension_numbers<[1], [0], [0], [1], [0, 0, 1, 1], [], []>} : vector<128x10xf32>, vector<10x32xf32>, vector<128x32xf32> -> vector<128x32xf32>
    %9 = vector.extract_strided_slice %0 {offsets = [0, 1], sizes = [128, 1], strides = [1, 1]} : vector<128x2xi32> to vector<128x1xi32>
    %10 = tpu.iota {dimensions = array<i32: 1>} : vector<128x8xi32>
    %11 = vector.broadcast %9 : vector<128x1xi32> to vector<128x8xi32>
    %12 = arith.cmpi eq, %11, %10 : vector<128x8xi32>
    %13 = arith.extui %12 : vector<128x8xi1> to vector<128x8xi32>
    %14 = arith.sitofp %13 : vector<128x8xi32> to vector<128x8xf32>
    %c0_3 = arith.constant 0 : index
    %c0_4 = arith.constant 0 : index
    %15 = vector.load %arg4[%c0_3, %c0_4] : memref<8x32xf32, #tpu.memory_space<vmem>>, vector<8x32xf32>
    %cst_5 = arith.constant dense<0.000000e+00> : vector<128x32xf32>
    %16 = tpu.matmul %14, %15, %cst_5 {dimension_numbers = #tpu.dot_dimension_numbers<[1], [0], [0], [1], [0, 0, 1, 1], [], []>} : vector<128x8xf32>, vector<8x32xf32>, vector<128x32xf32> -> vector<128x32xf32>
    %17 = arith.addf %8, %16 : vector<128x32xf32>
    %c0_6 = arith.constant 0 : index
    %c0_7 = arith.constant 0 : index
    %18 = vector.load %arg5[%c0_6, %c0_7] : memref<5x32xf32, #tpu.memory_space<vmem>>, vector<5x32xf32>
    %c0_8 = arith.constant 0 : index
    %c0_9 = arith.constant 0 : index
    %19 = vector.load %arg2[%c0_8, %c0_9] : memref<128x5xf32, #tpu.memory_space<vmem>>, vector<128x5xf32>
    %cst_10 = arith.constant dense<0.000000e+00> : vector<128x32xf32>
    %20 = tpu.matmul %19, %18, %cst_10 {dimension_numbers = #tpu.dot_dimension_numbers<[1], [0], [0], [1], [0, 0, 1, 1], [], []>} : vector<128x5xf32>, vector<5x32xf32>, vector<128x32xf32> -> vector<128x32xf32>
    %21 = arith.addf %17, %20 : vector<128x32xf32>
    %c0_11 = arith.constant 0 : index
    %c0_12 = arith.constant 0 : index
    %22 = vector.load %arg6[%c0_11, %c0_12] : memref<1x32xf32, #tpu.memory_space<vmem>>, vector<1x32xf32>
    %23 = vector.broadcast %22 : vector<1x32xf32> to vector<128x32xf32>
    %24 = arith.addf %21, %23 : vector<128x32xf32>
    %cst_13 = arith.constant 0.000000e+00 : f32
    %25 = vector.broadcast %cst_13 : f32 to vector<128x32xf32>
    %26 = arith.maximumf %24, %25 : vector<128x32xf32>
    %c0_14 = arith.constant 0 : index
    %c0_15 = arith.constant 0 : index
    %27 = vector.load %arg7[%c0_14, %c0_15] : memref<32x16xf32, #tpu.memory_space<vmem>>, vector<32x16xf32>
    %c0_16 = arith.constant 0 : index
    %c0_17 = arith.constant 0 : index
    %28 = vector.load %arg8[%c0_16, %c0_17] : memref<1x16xf32, #tpu.memory_space<vmem>>, vector<1x16xf32>
    %cst_18 = arith.constant dense<0.000000e+00> : vector<128x16xf32>
    %29 = tpu.matmul %26, %27, %cst_18 {dimension_numbers = #tpu.dot_dimension_numbers<[1], [0], [0], [1], [0, 0, 1, 1], [], []>} : vector<128x32xf32>, vector<32x16xf32>, vector<128x16xf32> -> vector<128x16xf32>
    %30 = vector.broadcast %28 : vector<1x16xf32> to vector<128x16xf32>
    %31 = arith.addf %29, %30 : vector<128x16xf32>
    %cst_19 = arith.constant 0.000000e+00 : f32
    %32 = vector.broadcast %cst_19 : f32 to vector<128x16xf32>
    %33 = arith.maximumf %31, %32 : vector<128x16xf32>
    %c0_20 = arith.constant 0 : index
    %c0_21 = arith.constant 0 : index
    %34 = vector.load %arg9[%c0_20, %c0_21] : memref<16x128xf32, #tpu.memory_space<vmem>>, vector<16x128xf32>
    %c0_22 = arith.constant 0 : index
    %c0_23 = arith.constant 0 : index
    %35 = vector.load %arg10[%c0_22, %c0_23] : memref<1x128xf32, #tpu.memory_space<vmem>>, vector<1x128xf32>
    %cst_24 = arith.constant dense<0.000000e+00> : vector<128x128xf32>
    %36 = tpu.matmul %33, %34, %cst_24 {dimension_numbers = #tpu.dot_dimension_numbers<[1], [0], [0], [1], [0, 0, 1, 1], [], []>} : vector<128x16xf32>, vector<16x128xf32>, vector<128x128xf32> -> vector<128x128xf32>
    %37 = vector.broadcast %35 : vector<1x128xf32> to vector<128x128xf32>
    %38 = arith.addf %36, %37 : vector<128x128xf32>
    %39 = arith.negf %38 : vector<128x128xf32>
    %40 = math.exp %39 : vector<128x128xf32>
    %cst_25 = arith.constant 1.000000e+00 : f32
    %41 = vector.broadcast %cst_25 : f32 to vector<128x128xf32>
    %42 = arith.addf %41, %40 : vector<128x128xf32>
    %43 = arith.divf %41, %42 : vector<128x128xf32>
    %cst_26 = arith.constant 5.000000e+00 : f32
    %44 = vector.broadcast %cst_26 : f32 to vector<128x128xf32>
    %45 = arith.mulf %43, %44 : vector<128x128xf32>
    %cst_27 = arith.constant 0.000000e+00 : f32
    %46 = vector.broadcast %cst_27 : f32 to vector<128x128xf32>
    %47 = arith.addf %45, %46 : vector<128x128xf32>
    %c0_28 = arith.constant 0 : index
    %c0_29 = arith.constant 0 : index
    %48 = vector.load %arg11[%c0_28, %c0_29] : memref<128x128xf32, #tpu.memory_space<vmem>>, vector<128x128xf32>
    tpu.vector_store %arg11[%c0_28, %c0_29], %47 {strides = array<i32>} : memref<128x128xf32, #tpu.memory_space<vmem>>, vector<128x128xf32>,
    return
  }
  func.func @transform_0(%arg0: i32) -> (i32, i32) {
    %c0_i32 = arith.constant 0 : i32
    %c0_i32_0 = arith.constant 0 : i32
    return %arg0, %c0_i32 : i32, i32
  }
  func.func @transform_1(%arg0: i32) -> (i32, i32) {
    %c0_i32 = arith.constant 0 : i32
    %c0_i32_0 = arith.constant 0 : i32
    return %arg0, %c0_i32 : i32, i32
  }
  func.func @transform_2(%arg0: i32) -> (i32, i32) {
    %c0_i32 = arith.constant 0 : i32
    %c0_i32_0 = arith.constant 0 : i32
    %c0_i32_1 = arith.constant 0 : i32
    return %c0_i32, %c0_i32_0 : i32, i32
  }
  func.func @transform_3(%arg0: i32) -> (i32, i32) {
    %c0_i32 = arith.constant 0 : i32
    %c0_i32_0 = arith.constant 0 : i32
    %c0_i32_1 = arith.constant 0 : i32
    return %c0_i32, %c0_i32_0 : i32, i32
  }
  func.func @transform_4(%arg0: i32) -> (i32, i32) {
    %c0_i32 = arith.constant 0 : i32
    %c0_i32_0 = arith.constant 0 : i32
    %c0_i32_1 = arith.constant 0 : i32
    return %c0_i32, %c0_i32_0 : i32, i32
  }
  func.func @transform_5(%arg0: i32) -> (i32, i32) {
    %c0_i32 = arith.constant 0 : i32
    %c0_i32_0 = arith.constant 0 : i32
    %c0_i32_1 = arith.constant 0 : i32
    return %c0_i32, %c0_i32_0 : i32, i32
  }
  func.func @transform_6(%arg0: i32) -> (i32, i32) {
    %c0_i32 = arith.constant 0 : i32
    %c0_i32_0 = arith.constant 0 : i32
    %c0_i32_1 = arith.constant 0 : i32
    return %c0_i32, %c0_i32_0 : i32, i32
  }
  func.func @transform_7(%arg0: i32) -> (i32, i32) {
    %c0_i32 = arith.constant 0 : i32
    %c0_i32_0 = arith.constant 0 : i32
    %c0_i32_1 = arith.constant 0 : i32
    return %c0_i32, %c0_i32_0 : i32, i32
  }
  func.func @transform_8(%arg0: i32) -> (i32, i32) {
    %c0_i32 = arith.constant 0 : i32
    %c0_i32_0 = arith.constant 0 : i32
    %c0_i32_1 = arith.constant 0 : i32
    return %c0_i32, %c0_i32_0 : i32, i32
  }
  func.func @transform_9(%arg0: i32) -> (i32, i32) {
    %c0_i32 = arith.constant 0 : i32
    %c0_i32_0 = arith.constant 0 : i32
    %c0_i32_1 = arith.constant 0 : i32
    return %c0_i32, %c0_i32_0 : i32, i32
  }
  func.func @transform_10(%arg0: i32) -> (i32, i32) {
    %c0_i32 = arith.constant 0 : i32
    %c0_i32_0 = arith.constant 0 : i32
    return %arg0, %c0_i32 : i32, i32
  }
}

</mosaic_0001>

<bundles_post_ra>
// kernel: tpu_custom_call.1
= control target key start
LH: loop header
LB: loop body
LE: loop exit
PB: predicated region body
PF: predicated region fallthrough
CT: control target
= control target key end

     0   :  { %15 = vsyncpa [#allocation3], 0  ;;  %s2995_s0 = inlined_call_operand.vmem [shape: s32[256,2], index: 0, kind: input, shape index: {}]   ;;  %s2996_s1 = inlined_call_operand.vmem [shape: f32[256,5], index: 1, kind: input, shape index: {}]   ;;  %s2997_s2 = inlined_call_operand.vmem [shape: f32[10,32], index: 2, kind: input, shape index: {}]   ;;  %s2998_s3 = inlined_call_operand.vmem [shape: f32[8,32], index: 3, kind: input, shape index: {}]   ;;  %s2999_s4 = inlined_call_operand.vmem [shape: f32[5,32], index: 4, kind: input, shape index: {}]   ;;  %s3000_s5 = inlined_call_operand.vmem [shape: f32[1,32], index: 5, kind: input, shape index: {}]   ;;  %s3001_s6 = inlined_call_operand.vmem [shape: f32[32,16], index: 6, kind: input, shape index: {}]   ;;  %s3002_s7 = inlined_call_operand.vmem [shape: f32[1,16], index: 7, kind: input, shape index: {}]   ;;  %s3003_s8 = inlined_call_operand.vmem [shape: f32[16,128], index: 8, kind: input, shape index: {}]   ;;  %s3004_s9 = inlined_call_operand.vmem [shape: f32[1,128], index: 9, kind: input, shape index: {}]   ;;  %s3005_s10 = inlined_call_operand.hbm [shape: f32[256,128], index: 10, kind: output, shape index: {}]  }
   0x1   :  { %17 = vsyncpa [#allocation3 + $0x1], 0  ;;  %s2585_s13 = smov 0   ;;  %s2587_s14 = smov 0  }
   0x2   :  { %s2589_s15 = smov 0   ;;  %s2591_s16 = smov 0  }
   0x3 LB: > { %s2606_s17 = sadd.s32 4294967295, %s2521_s16   ;;  %s1914_s18 = sadd.s32 4294967294, %s2521_s16   ;;  %s2521_s16 = sphi %s2591_s16, %s3013_s16   ;;  %s2517_s15 = sphi %s2589_s15, %s3012_s15   ;;  %s2513_s14 = sphi %s2587_s14, %s3011_s14   ;;  %s2509_s13 = sphi %s2585_s13, %s3010_s13  }
   0x4   : > { %s2610_s19 = sadd.s32 1, %s2521_s16   ;;  %s250_s20 = sadd.s32 1, %s2517_s15 }
   0x5   : > { %s247_s21 = ssub.s32 %s2521_s16, %s2610_s19  ;;  %p260_p0 = scmp.ne.s32.totalorder %s2517_s15, %s2513_s14 }
   0x6   : > { %p248_p1 = scmp.eq.s32.totalorder %s247_s21, 0  ;;  %p261_p2 = scmp.eq.s32.totalorder %s2606_s17, 1 }
   0x7   : > { %p266_p3 = scmp.ne.s32.totalorder %s2513_s14, %s2509_s13  ;;  %p267_p4 = scmp.eq.s32.totalorder %s1914_s18, 1 }
   0x8   : > { %s2621_s22 = scalar_select %p248_p1, %s2517_s15, %s250_s20  }
   0x9   : > { %p2623_p5 = por %p261_p2, %p260_p0  ;;  %p2627_p6 = por %p267_p4, %p266_p3 }
   0xa   : > { %p1917_p7 = scmp.ge.s32.totalorder %s2521_s16, 1  ;;  %p327_p8 = scmp.lt.s32.totalorder %s2521_s16, 3 }
   0xc   : > { %p328_p9 = pnand %p1917_p7, %p327_p8 }
   0xd   : > { %s1919_s25 = sshll.u32 (!%p328_p9), %s2606_s17, 4  ;;  %v2523_v0 = vmov (!%p328_p9), 1   ;;  %v595_v6 = vld [vmem:[%s2998_s3] sm:$0xff] (!%p328_p9)  ;;  %v498_v9 = vld [vmem:[%s2997_s2 + $0x8] sm:$0x3] (!%p328_p9)  ;;  %vm839_vm0 = vcmask (!%p328_p9), 1041408   ;;  %v399_v26 = vlaneseq (!%p328_p9) }
   0xe   : > { %331 = sbr.rel (%p328_p9) target bundleno = 931 (0x3a3), region = 60  ;;  %2390 = vset.pattern.permute.xlu1 (!%p328_p9), %v2523_v0  ;;  %2389 = vset.pattern.permute.xlu0 (!%p328_p9), %v2523_v0  ;;  %p371_p10 = scmp.lt.s32.totalorder (!%p328_p9), %s1919_s25, 31  ;;  %v497_v8 = vld [vmem:[%s2997_s2] sm:$0xff] (!%p328_p9)  ;;  %vm2524_vm1 = vmmov (!%p328_p9), 1   ;;  %v2525_v14 = vmov (!%p328_p9), 0   ;;  %v1259_v24 = vld [vmem:[%s3001_s6 + $0x8] sm:$0xff] (!%p328_p9) }
   0xf   : > { %2152 = vmatprep.subr.mxu0 (!%p328_p9), %v595_v6  ;;  %2310 = vmatprep.subr.mxu1 (!%p328_p9), %v595_v6  ;;  %v2659_v10 = vpack.c.bf16 (!%p328_p9), %v498_v9, %v497_v8  ;;  %vm2661_vm2 = vmpackc.low (!%p328_p9), %vm839_vm0, %vm2524_vm1  ;;  %v1258_v23 = vld [vmem:[%s3001_s6] sm:$0xff] (!%p328_p9)  ;;  %v2687_v27 = vand.u32 (!%p328_p9), 127, %v399_v26  ;;  %vm596_vm3 = vcmask (!%p328_p9), 64512   ;;  %v2526_v30 = vmov (!%p328_p9), 0.0   ;;  %s367_s28 = sand.u32 (!%p328_p9), 1, %s2513_s14  }
  0x10   : > { %2153 = vmatpush3.msra.mxu0 (!%p328_p9), %v595_v6  ;;  %2311 = vmatpush3.msra.mxu1 (!%p328_p9), %v595_v6  ;;  %v2684_v25 = vpack.c.bf16 (!%p328_p9), %v1259_v24, %v1258_v23  ;;  %v988_v35 = vld [vmem:[%s2999_s4] sm:$0x1f] (!%p328_p9)  ;;  %vm1054_vm7 = vcmask (!%p328_p9), 1044480   ;;  %vm790_vm13 = vcmask (!%p328_p9), 80896   ;;  %s1918_s30 = sshll.u32 (!%p328_p9), %s367_s28, 7 }
  0x11   : > { %2294 = vmatprep.subr.msk.bf16.mxu0 (!%p328_p9), %vm2661_vm2, %v2659_v10  ;;  %s2923_s11 = scalar_lea.vmem (!%p328_p9), [#allocation2], %s1918_s30 }
  0x12   : > { %2299 = vmatprep.subr.bf16.mxu1 (!%p328_p9), %v2684_v25  ;;  %s1840_s12 = sshll.u32 (!%p328_p9), %s2923_s11, 4  ;;  %s2948_s12 = int_to_ptr.vmem [resolvable:$true] %s1840_s12 }
  0x15   : > { %s3015_s25 = smov (!%p371_p10, %s1919_s25), 31 }
  0x16   : > { %s1920_s26 = sshll.u32 %s3015_s25, 3  ;;  %s2459_s25 = scalar_lea.vmem %s2948_s12, 2048 }
  0x17   : > { %s2642_s29 = scalar_lea.vmem %s2995_s0, %s1920_s26  ;;  %s2766_s21 = scalar_lea.vmem %s2996_s1, %s1920_s26 }
  0x18   : > { %v385_v1 = vld [vmem:[%s2642_s29 + $0x10] sm:$0xff]  ;;  %v383_v2 = vld [vmem:[%s2642_s29] sm:$0xff]  ;;  %v386_v3 = vld [vmem:[%s2642_s29 + $0x18] sm:$0xff]  ;;  %p2460_p11 = scmp.ne.s32.totalorder %s2948_s12, %s2459_s25  ;;  %s2527_s26 = smov [#allocation2]  }
  0x19   : > { %506 = vperm.xlu1 %2390, %v385_v1   ;;  %500 = vperm.xlu0 %2389, %v383_v2   ;;  %v384_v4 = vld [vmem:[%s2642_s29 + $0x8] sm:$0xff]  ;;  %v387_v7 = vld [vmem:[%s2642_s29 + $0x20] sm:$0xff]  ;;  %v390_v12 = vld [vmem:[%s2642_s29 + $0x38] sm:$0xff]  ;;  %s2463_s27 = sshll.u32 %s2527_s26, 4  ;;  %s2464_s27 = int_to_ptr.vmem [resolvable:$false] %s2463_s27 }
  0x1a   : > { %v388_v5 = vld [vmem:[%s2642_s29 + $0x28] sm:$0xff]  ;;  %v389_v13 = vld [vmem:[%s2642_s29 + $0x30] sm:$0xff]  ;;  %v391_v15 = vld [vmem:[%s2642_s29 + $0x40] sm:$0xff]  ;;  %p2461_p12 = pnand %p2460_p11, %p2623_p5  ;;  %s2465_s30 = scalar_lea.vmem %s2464_s27, 4096 }
  0x1b   : > { %v392_v16 = vld [vmem:[%s2642_s29 + $0x48] sm:$0xff]  ;;  %v393_v17 = vld [vmem:[%s2642_s29 + $0x50] sm:$0xff]  ;;  %v394_v18 = vld [vmem:[%s2642_s29 + $0x58] sm:$0xff]  ;;  %p2466_p0 = scmp.lt.s32.totalorder %s2948_s12, %s2464_s27  ;;  %p2467_p1 = scmp.lt.s32.totalorder %s2465_s30, %s2459_s25 }
  0x1c   : > { %v395_v19 = vld [vmem:[%s2642_s29 + $0x60] sm:$0xff]  ;;  %v396_v20 = vld [vmem:[%s2642_s29 + $0x68] sm:$0xff]  ;;  %v397_v21 = vld [vmem:[%s2642_s29 + $0x70] sm:$0xff]  ;;  %p2462_p13 = pneg %p2461_p12 }
  0x1d   : > { %509 = vperm.xlu1 %2390, %v386_v3   ;;  %503 = vperm.xlu0 %2389, %v384_v4   ;;  %v398_v22 = vld [vmem:[%s2642_s29 + $0x78] sm:$0xff]  ;;  %v993_v26 = vld [vmem:[%s2766_s21 + $0x20] sm:$0xff]  ;;  %s2061_s29 = sshll.u32 %s2606_s17, 11  ;;  %s2954_s17 = scalar_lea.sflag [#allocation3], %s367_s28 }
  0x1e   : > { %v992_v24 = vld [vmem:[%s2766_s21 + $0x18] sm:$0xff]  ;;  %p2468_p2 = por %p2467_p1, %p2466_p0 }
  0x20   : > { %p2469_p3 = pnand %p2468_p2, %p2462_p13 }
  0x21   : > { %515 = vperm.xlu1 %2390, %v388_v5   ;;  %512 = vperm.xlu0 %2389, %v387_v7  }
  0x25   : > { %521 = vperm.xlu1 %2390, %v390_v12   ;;  %518 = vperm.xlu0 %2389, %v389_v13  }
  0x29   : > { %2392 = vset.pattern.permute.xlu1 %v2525_v14  ;;  %2391 = vset.pattern.permute.xlu0 %v2525_v14 }
  0x2a   : > { %405 = vperm.xlu1 %2392, %v384_v4   ;;  %402 = vperm.xlu0 %2391, %v383_v2  }
  0x2e   : > { %408 = vperm.xlu1 %2392, %v385_v1   ;;  %411 = vperm.xlu0 %2391, %v386_v3  }
  0x32   : > { %414 = vperm.xlu1 %2392, %v387_v7   ;;  %417 = vperm.xlu0 %2391, %v388_v5  }
  0x36   : > { %420 = vperm.xlu1 %2392, %v389_v13   ;;  %423 = vperm.xlu0 %2391, %v390_v12   ;;  %v989_v13 = vld [vmem:[%s2766_s21] sm:$0xff] }
  0x3a   : > { %426 = vperm.xlu1 %2392, %v391_v15   ;;  %429 = vperm.xlu0 %2391, %v392_v16  }
  0x3e   : > { %432 = vperm.xlu1 %2392, %v393_v17   ;;  %435 = vperm.xlu0 %2391, %v394_v18  }
  0x42   : > { %438 = vperm.xlu1 %2392, %v395_v19   ;;  %441 = vperm.xlu0 %2391, %v396_v20  }
  0x46   : > { %444 = vperm.xlu1 %2392, %v397_v21   ;;  %447 = vperm.xlu0 %2391, %v398_v22  }
  0x4a   : > { %2393 = vset.pattern.permute.xlu1 %v2523_v0  ;;  %2394 = vset.pattern.permute.xlu0 %v2523_v0 }
  0x4b   : > { %524 = vperm.xlu1 %2393, %v391_v15   ;;  %527 = vperm.xlu0 %2394, %v392_v16  }
  0x4f   : > { %530 = vperm.xlu1 %2393, %v393_v17   ;;  %536 = vperm.xlu0 %2394, %v395_v19  }
  0x53   : > { %533 = vperm.xlu1 %2393, %v394_v18   ;;  %542 = vperm.xlu0 %2394, %v397_v21   ;;  %v990_v18 = vld [vmem:[%s2766_s21 + $0x8] sm:$0xff] }
  0x57   : > { %539 = vperm.xlu1 %2393, %v396_v20   ;;  %v991_v20 = vld [vmem:[%s2766_s21 + $0x10] sm:$0xff] }
  0x5b   : > { %545 = vperm.xlu1 %2393, %v398_v22  }
  0x98   : > { %v507_v28 = vpop.permute.xlu1 %506  ;;  %v501_v29 = vpop.permute.xlu0 %500 }
  0x99   : > { %vm547_vm4 = vcmp.eq.s32.totalorder %v501_v29, %v2687_v27  ;;  %vm549_vm5 = vcmp.eq.s32.totalorder %v507_v28, %v2687_v27 }
  0x9a   : > { %v1939_v31 = vsel %vm547_vm4, 1.0, %v2526_v30  ;;  %v1941_v36 = vsel %vm549_vm5, 1.0, %v2526_v30 }
  0x9b   : > { %2154 = vmatprep.mubr.msk.f32.mxu0 %vm596_vm3, %v1939_v31 }
  0x9c   : > { %v510_v32 = vpop.permute.xlu1 %509  ;;  %v504_v33 = vpop.permute.xlu0 %503 }
  0x9d   : > { %vm548_vm6 = vcmp.eq.s32.totalorder %v504_v33, %v2687_v27  ;;  %vm550_vm8 = vcmp.eq.s32.totalorder %v510_v32, %v2687_v27  ;;  %v994_v32 = vld [vmem:[%s2766_s21 + $0x28] sm:$0xff]  ;;  %v995_v33 = vld [vmem:[%s2766_s21 + $0x30] sm:$0xff] }
  0x9e   : > { %v1940_v34 = vsel %vm548_vm6, 1.0, %v2526_v30  ;;  %v1942_v39 = vsel %vm550_vm8, 1.0, %v2526_v30 }
  0x9f   : > { %2155 = vmatmul.mubr.msk.f32.vlgmr.msra.gmra.mrb[0].mxu0 %vm596_vm3, %v1940_v34 }
  0xa0   : > { %2297 = vmatpush3.bf16.msk.msra.mxu0 %vm2661_vm2, %v2659_v10  ;;  %v516_v37 = vpop.permute.xlu1 %515  ;;  %2157 = vmatprep.mubr.msk.f32.mxu0 %vm596_vm3, %v1941_v36  ;;  %v513_v38 = vpop.permute.xlu0 %512 }
  0xa1   : > { %vm551_vm9 = vcmp.eq.s32.totalorder %v513_v38, %v2687_v27  ;;  %2206 = vmatprep.subr.msk.mxu0 %vm1054_vm7, %v988_v35  ;;  %vm552_vm10 = vcmp.eq.s32.totalorder %v516_v37, %v2687_v27  ;;  %v996_v37 = vld [vmem:[%s2766_s21 + $0x38] sm:$0xff]  ;;  %v997_v38 = vld [vmem:[%s2766_s21 + $0x40] sm:$0xff] }
  0xa2   : > { %v1943_v40 = vsel %vm551_vm9, 1.0, %v2526_v30  ;;  %v1944_v43 = vsel %vm552_vm10, 1.0, %v2526_v30 }
  0xa3   : > { %2158 = vmatmul.mubr.msk.f32.gmra.mrb[2].mxu0 %vm596_vm3, %v1942_v39 }
  0xa4   : > { %v522_v41 = vpop.permute.xlu1 %521  ;;  %2160 = vmatprep.mubr.msk.f32.mxu0 %vm596_vm3, %v1943_v40  ;;  %v519_v42 = vpop.permute.xlu0 %518 }
  0xa5   : > { %vm553_vm11 = vcmp.eq.s32.totalorder %v519_v42, %v2687_v27  ;;  %vm554_vm12 = vcmp.eq.s32.totalorder %v522_v41, %v2687_v27  ;;  %v998_v41 = vld [vmem:[%s2766_s21 + $0x48] sm:$0xff]  ;;  %v999_v42 = vld [vmem:[%s2766_s21 + $0x50] sm:$0xff] }
  0xa6   : > { %v1945_v44 = vsel %vm553_vm11, 1.0, %v2526_v30  ;;  %v1946_v47 = vsel %vm554_vm12, 1.0, %v2526_v30 }
  0xa7   : > { %2161 = vmatmul.mubr.msk.f32.gmra.mrb[4].mxu0 %vm596_vm3, %v1944_v43  ;;  %v1000_v43 = vld [vmem:[%s2766_s21 + $0x58] sm:$0xff] }
  0xa8   : > { %2163 = vmatprep.mubr.msk.f32.mxu0 %vm596_vm3, %v1945_v44  ;;  %v1001_v44 = vld [vmem:[%s2766_s21 + $0x60] sm:$0xff] }
  0xa9   : > { %v406_v45 = vpop.permute.xlu1 %405  ;;  %v403_v46 = vpop.permute.xlu0 %402 }
  0xaa   : > { %vm450_vm14 = vcmp.eq.s32.totalorder %v406_v45, %v2687_v27  ;;  %vm449_vm15 = vcmp.eq.s32.totalorder %v403_v46, %v2687_v27  ;;  %v1003_v45 = vld [vmem:[%s2766_s21 + $0x70] sm:$0xff] }
  0xab   : > { %v1923_v48 = vsel %vm449_vm15, 1.0, %v2526_v30  ;;  %2164 = vmatmul.mubr.msk.f32.gmra.mrb[6].mxu0 %vm596_vm3, %v1946_v47  ;;  %v1924_v49 = vsel %vm450_vm14, 1.0, %v2526_v30  ;;  %v1260_v46 = vld [vmem:[%s3001_s6 + $0x10] sm:$0xff]  ;;  %v1261_v47 = vld [vmem:[%s3001_s6 + $0x18] sm:$0xff] }
  0xac   : > { %2182 = vmatprep.mubr.msk.f32.mxu0 %vm790_vm13, %v1923_v48  ;;  %v2302_v48 = vpack.c.bf16 %v1261_v47, %v1260_v46 }
  0xad   : > { %v409_v50 = vpop.permute.xlu1 %408  ;;  %v412_v51 = vpop.permute.xlu0 %411 }
  0xae   : > { %vm451_vm0 = vcmp.eq.s32.totalorder %v409_v50, %v2687_v27  ;;  %vm452_vm1 = vcmp.eq.s32.totalorder %v412_v51, %v2687_v27  ;;  %v1480_v50 = vld [vmem:[%s3003_s8 + $0x8] sm:$0xff] }
  0xaf   : > { %v1925_v52 = vsel %vm451_vm0, 1.0, %v2526_v30  ;;  %2183 = vmatmul.mubr.msk.f32.vlgmr.msra.gmra.mrb[0].mxu0 %vm790_vm13, %v1924_v49  ;;  %v1926_v55 = vsel %vm452_vm1, 1.0, %v2526_v30  ;;  %vm1005_vm0 = vcmask 39936   ;;  %v1479_v49 = vld [vmem:[%s3003_s8] sm:$0xff] }
  0xb0   : > { %2207 = vmatpush3.msk.msra.mxu0 %vm1054_vm7, %v988_v35  ;;  %2185 = vmatprep.mubr.msk.f32.mxu0 %vm790_vm13, %v1925_v52  ;;  %v2306_v51 = vpack.c.bf16 %v1480_v50, %v1479_v49  ;;  %v2848_v52 = vld [vmem:[%s3000_s5] ss:$0 sm:$0xff] }
  0xb1   : > { %v415_v53 = vpop.permute.xlu1 %414  ;;  %v418_v54 = vpop.permute.xlu0 %417 }
  0xb2   : > { %vm453_vm2 = vcmp.eq.s32.totalorder %v415_v53, %v2687_v27  ;;  %vm454_vm4 = vcmp.eq.s32.totalorder %v418_v54, %v2687_v27 }
  0xb3   : > { %v1927_v56 = vsel %vm453_vm2, 1.0, %v2526_v30  ;;  %2186 = vmatmul.mubr.msk.f32.gmra.mrb[2].mxu0 %vm790_vm13, %v1926_v55  ;;  %v1928_v59 = vsel %vm454_vm4, 1.0, %v2526_v30 }
  0xb4   : > { %2188 = vmatprep.mubr.msk.f32.mxu0 %vm790_vm13, %v1927_v56 }
  0xb5   : > { %v421_v57 = vpop.permute.xlu1 %420  ;;  %v424_v58 = vpop.permute.xlu0 %423 }
  0xb6   : > { %vm455_vm5 = vcmp.eq.s32.totalorder %v421_v57, %v2687_v27  ;;  %vm456_vm6 = vcmp.eq.s32.totalorder %v424_v58, %v2687_v27 }
  0xb7   : > { %v1929_v60 = vsel %vm455_vm5, 1.0, %v2526_v30  ;;  %2189 = vmatmul.mubr.msk.f32.gmra.mrb[4].mxu0 %vm790_vm13, %v1928_v59  ;;  %v1930_v63 = vsel %vm456_vm6, 1.0, %v2526_v30 }
  0xb8   : > { %2191 = vmatprep.mubr.msk.f32.mxu0 %vm790_vm13, %v1929_v60 }
  0xb9   : > { %v427_v61 = vpop.permute.xlu1 %426  ;;  %v430_v62 = vpop.permute.xlu0 %429 }
  0xba   : > { %vm457_vm7 = vcmp.eq.s32.totalorder %v427_v61, %v2687_v27  ;;  %vm458_vm8 = vcmp.eq.s32.totalorder %v430_v62, %v2687_v27 }
  0xbb   : > { %v1931_v0 = vsel %vm457_vm7, 1.0, %v2526_v30  ;;  %2192 = vmatmul.mubr.msk.f32.gmra.mrb[6].mxu0 %vm790_vm13, %v1930_v63  ;;  %v1932_v3 = vsel %vm458_vm8, 1.0, %v2526_v30 }
  0xbc   : > { %2194 = vmatprep.mubr.msk.f32.mxu0 %vm790_vm13, %v1931_v0 }
  0xbd   : > { %v433_v1 = vpop.permute.xlu1 %432  ;;  %v436_v2 = vpop.permute.xlu0 %435 }
  0xbe   : > { %vm459_vm9 = vcmp.eq.s32.totalorder %v433_v1, %v2687_v27  ;;  %vm460_vm10 = vcmp.eq.s32.totalorder %v436_v2, %v2687_v27 }
  0xbf   : > { %v1933_v4 = vsel %vm459_vm9, 1.0, %v2526_v30  ;;  %2195 = vmatmul.mubr.msk.f32.gmra.mrb[8].mxu0 %vm790_vm13, %v1932_v3  ;;  %v1934_v7 = vsel %vm460_vm10, 1.0, %v2526_v30  ;;  %vm1488_vm9 = vcmask 130048  }
  0xc0   : > { %2197 = vmatprep.mubr.msk.f32.mxu0 %vm790_vm13, %v1933_v4 }
  0xc1   : > { %v439_v5 = vpop.permute.xlu1 %438  ;;  %v442_v6 = vpop.permute.xlu0 %441 }
  0xc2   : > { %vm461_vm11 = vcmp.eq.s32.totalorder %v439_v5, %v2687_v27  ;;  %vm462_vm12 = vcmp.eq.s32.totalorder %v442_v6, %v2687_v27 }
  0xc3   : > { %v1935_v8 = vsel %vm461_vm11, 1.0, %v2526_v30  ;;  %2198 = vmatmul.mubr.msk.f32.gmra.mrb[10].mxu0 %vm790_vm13, %v1934_v7  ;;  %v1936_v11 = vsel %vm462_vm12, 1.0, %v2526_v30 }
  0xc4   : > { %2200 = vmatprep.mubr.msk.f32.mxu0 %vm790_vm13, %v1935_v8 }
  0xc5   : > { %v445_v9 = vpop.permute.xlu1 %444  ;;  %v448_v10 = vpop.permute.xlu0 %447 }
  0xc6   : > { %vm463_vm14 = vcmp.eq.s32.totalorder %v445_v9, %v2687_v27  ;;  %vm464_vm15 = vcmp.eq.s32.totalorder %v448_v10, %v2687_v27 }
  0xc7   : > { %v1937_v12 = vsel %vm463_vm14, 1.0, %v2526_v30  ;;  %2201 = vmatmul.mubr.msk.f32.gmra.mrb[12].mxu0 %vm790_vm13, %v1936_v11  ;;  %v1938_v14 = vsel %vm464_vm15, 1.0, %v2526_v30 }
  0xc8   : > { %2203 = vmatprep.mubr.msk.f32.mxu0 %vm790_vm13, %v1937_v12 }
  0xca   : > { %v525_v15 = vpop.permute.xlu1 %524  ;;  %v528_v16 = vpop.permute.xlu0 %527 }
  0xcb   : > { %vm555_vm1 = vcmp.eq.s32.totalorder %v525_v15, %v2687_v27  ;;  %2204 = vmatmul.mubr.msk.f32.gmra.mrb[14].mxu0 %vm790_vm13, %v1938_v14  ;;  %vm556_vm2 = vcmp.eq.s32.totalorder %v528_v16, %v2687_v27 }
  0xcc   : > { %2208 = vmatprep.mubr.msk.f32.mxu0 %vm1005_vm0, %v989_v13  ;;  %v1948_v17 = vsel %vm556_vm2, 1.0, %v2526_v30  ;;  %v1947_v19 = vsel %vm555_vm1, 1.0, %v2526_v30 }
  0xcd   : > { %2166 = vmatprep.mubr.msk.f32.mxu1 %vm596_vm3, %v1947_v19 }
  0xce   : > { %v531_v21 = vpop.permute.xlu1 %530  ;;  %2167 = vmatmul.mubr.msk.f32.vlgmr.msra.gmra.mrb[0].mxu1 %vm596_vm3, %v1948_v17  ;;  %v537_v22 = vpop.permute.xlu0 %536 }
  0xcf   : > { %vm557_vm13 = vcmp.eq.s32.totalorder %v531_v21, %v2687_v27  ;;  %2209 = vmatmul.mubr.msk.f32.vlgmr.msra.gmra.mrb[0].mxu0 %vm1005_vm0, %v990_v18  ;;  %2301 = vmatpush3.bf16.msra.mxu1 %v2684_v25  ;;  %vm559_vm4 = vcmp.eq.s32.totalorder %v537_v22, %v2687_v27 }
  0xd0   : > { %v1949_v23 = vsel %vm557_vm13, 1.0, %v2526_v30  ;;  %2211 = vmatprep.mubr.msk.f32.mxu0 %vm1005_vm0, %v991_v20  ;;  %v1951_v25 = vsel %vm559_vm4, 1.0, %v2526_v30  ;;  %2303 = vmatprep.subr.bf16.mxu1 %v2302_v48 }
  0xd1   : > { %2169 = vmatprep.mubr.msk.f32.mxu1 %vm596_vm3, %v1949_v23 }
  0xd2   : > { %v534_v28 = vpop.permute.xlu1 %533  ;;  %v543_v29 = vpop.permute.xlu0 %542 }
  0xd3   : > { %vm558_vm5 = vcmp.eq.s32.totalorder %v534_v28, %v2687_v27  ;;  %2212 = vmatmul.mubr.msk.f32.gmra.mrb[2].mxu0 %vm1005_vm0, %v992_v24  ;;  %vm561_vm6 = vcmp.eq.s32.totalorder %v543_v29, %v2687_v27  ;;  %2305 = vmatpush3.bf16.msra.mxu1 %v2302_v48 }
  0xd4   : > { %v1950_v31 = vsel %vm558_vm5, 1.0, %v2526_v30  ;;  %2214 = vmatprep.mubr.msk.f32.mxu0 %vm1005_vm0, %v993_v26  ;;  %v1953_v35 = vsel %vm561_vm6, 1.0, %v2526_v30  ;;  %2307 = vmatprep.subr.bf16.mxu1 %v2306_v51 }
  0xd5   : > { %2170 = vmatmul.mubr.msk.f32.gmra.mrb[2].mxu1 %vm596_vm3, %v1950_v31 }
  0xd6   : > { %v540_v34 = vpop.permute.xlu1 %539  ;;  %2172 = vmatprep.mubr.msk.f32.mxu1 %vm596_vm3, %v1951_v25 }
  0xd7   : > { %vm560_vm7 = vcmp.eq.s32.totalorder %v540_v34, %v2687_v27  ;;  %2215 = vmatmul.mubr.msk.f32.gmra.mrb[4].mxu0 %vm1005_vm0, %v994_v32 }
  0xd8   : > { %v1952_v36 = vsel %vm560_vm7, 1.0, %v2526_v30  ;;  %2217 = vmatprep.mubr.msk.f32.mxu0 %vm1005_vm0, %v995_v33 }
  0xd9   : > { %2173 = vmatmul.mubr.msk.f32.gmra.mrb[4].mxu1 %vm596_vm3, %v1952_v36 }
  0xda   : > { %v546_v39 = vpop.permute.xlu1 %545  ;;  %2175 = vmatprep.mubr.msk.f32.mxu1 %vm596_vm3, %v1953_v35 }
  0xdb   : > { %vm562_vm8 = vcmp.eq.s32.totalorder %v546_v39, %v2687_v27  ;;  %2218 = vmatmul.mubr.msk.f32.gmra.mrb[6].mxu0 %vm1005_vm0, %v996_v37  ;;  %v1002_v27 = vld [vmem:[%s2766_s21 + $0x68] sm:$0xff] }
  0xdc   : > { %v1954_v40 = vsel %vm562_vm8, 1.0, %v2526_v30  ;;  %2220 = vmatprep.mubr.msk.f32.mxu0 %vm1005_vm0, %v997_v38  ;;  %v1004_v30 = vld [vmem:[%s2766_s21 + $0x78] sm:$0xff]  ;;  %s2946_s21 = scalar_lea.hbm %s3005_s10, %s2061_s29 }
  0xdd   : > { %2176 = vmatmul.mubr.msk.f32.gmra.mrb[6].mxu1 %vm596_vm3, %v1954_v40  ;;  %vm1269_vm3 = vcmask 261120  }
  0xdf   : > { %2221 = vmatmul.mubr.msk.f32.gmra.mrb[8].mxu0 %vm1005_vm0, %v998_v41 }
  0xe0   : > { %2223 = vmatprep.mubr.msk.f32.mxu0 %vm1005_vm0, %v999_v42 }
  0xe3   : > { %2224 = vmatmul.mubr.msk.f32.gmra.mrb[10].mxu0 %vm1005_vm0, %v1000_v43 }
  0xe4   : > { %2226 = vmatprep.mubr.msk.f32.mxu0 %vm1005_vm0, %v1001_v44 }
  0xe7   : > { %2227 = vmatmul.mubr.msk.f32.gmra.mrb[12].mxu0 %vm1005_vm0, %v1002_v27 }
  0xe8   : > { %2229 = vmatprep.mubr.msk.f32.mxu0 %vm1005_vm0, %v1003_v45 }
  0xeb   : > { %2230 = vmatmul.mubr.msk.f32.gmra.mrb[14].mxu0 %vm1005_vm0, %v1004_v30 }
 0x1a1   : > { %v2168_v53 = vpop.f32.mrb[0].mxu1 }
 0x1a2   : > { %v2210_v54 = vpop.f32.mrb[0].mxu0  ;;  %v751_v55 = vpop.f32.mrb[1].mxu1 }
 0x1a3   : > { %v1227_v56 = vadd.f32 %v2210_v54, %v2848_v52  ;;  %v1124_v57 = vpop.f32.mrb[1].mxu0  ;;  %v2006_v54 = vld [vmem:[%s3002_s7] ss:$0 sm:$0xff] }
 0x1a4   : > { %v1226_v58 = vadd.f32 %v2848_v52, %v1124_v57 }
 0x1a5   : > { %v1243_v61 = vmax.f32 %v1227_v56, 0.0 }
 0x1a6   : > { %v1242_v59 = vmax.f32 %v1226_v58, 0.0  ;;  %v2213_v60 = vpop.f32.mrb[2].mxu0 }
 0x1a7   : > { %v1229_v62 = vadd.f32 %v2213_v60, %v2848_v52  ;;  %v1134_v63 = vpop.f32.mrb[3].mxu0 }
 0x1a8   : > { %v1228_v0 = vadd.f32 %v2848_v52, %v1134_v63  ;;  %2240 = vmatprep.mubr.msk.f32.mxu1 %vm1269_vm3, %v1242_v59  ;;  %v2171_v1 = vpop.f32.mrb[2].mxu1 }
 0x1a9   : > { %2241 = vmatmul.mubr.msk.f32.vlgmr.msra.gmra.mrb[8].mxu1 %vm1269_vm3, %v1243_v61  ;;  %v761_v2 = vpop.f32.mrb[3].mxu1  ;;  %v1245_v5 = vmax.f32 %v1229_v62, 0.0 }
 0x1aa   : > { %v1244_v3 = vmax.f32 %v1228_v0, 0.0  ;;  %v2216_v4 = vpop.f32.mrb[4].mxu0  ;;  %2309 = vmatpush3.bf16.msra.mxu1 %v2306_v51 }
 0x1ab   : > { %v1231_v6 = vadd.f32 %v2216_v4, %v2848_v52  ;;  %v1144_v7 = vpop.f32.mrb[5].mxu0 }
 0x1ac   : > { %v1230_v8 = vadd.f32 %v2848_v52, %v1144_v7  ;;  %2243 = vmatprep.mubr.msk.f32.mxu1 %vm1269_vm3, %v1244_v3  ;;  %v2174_v9 = vpop.f32.mrb[4].mxu1 }
 0x1ad   : > { %2244 = vmatmul.mubr.msk.f32.gmra.mrb[10].mxu1 %vm1269_vm3, %v1245_v5  ;;  %v771_v10 = vpop.f32.mrb[5].mxu1  ;;  %v1247_v13 = vmax.f32 %v1231_v6, 0.0 }
 0x1ae   : > { %v1246_v11 = vmax.f32 %v1230_v8, 0.0  ;;  %v2219_v12 = vpop.f32.mrb[6].mxu0 }
 0x1af   : > { %v1233_v14 = vadd.f32 %v2219_v12, %v2848_v52  ;;  %v1154_v15 = vpop.f32.mrb[7].mxu0 }
 0x1b0   : > { %v1232_v16 = vadd.f32 %v2848_v52, %v1154_v15  ;;  %v2177_v17 = vpop.f32.mrb[6].mxu1  ;;  %2246 = vmatprep.mubr.msk.f32.mxu1 %vm1269_vm3, %v1246_v11 }
 0x1b1   : > { %v781_v18 = vpop.f32.mrb[7].mxu1  ;;  %2247 = vmatmul.mubr.msk.f32.gmra.mrb[12].mxu1 %vm1269_vm3, %v1247_v13  ;;  %v1249_v21 = vmax.f32 %v1233_v14, 0.0 }
 0x1b2   : > { %v1248_v19 = vmax.f32 %v1232_v16, 0.0  ;;  %v2222_v20 = vpop.f32.mrb[8].mxu0 }
 0x1b3   : > { %v2312_v22 = vadd.f32 %v2222_v20, %v2168_v53  ;;  %v1164_v23 = vpop.f32.mrb[9].mxu0 }
 0x1b4   : > { %v2313_v24 = vadd.f32 %v1164_v23, %v751_v55  ;;  %2249 = vmatprep.mubr.msk.f32.mxu1 %vm1269_vm3, %v1248_v19 }
 0x1b5   : > { %v1235_v26 = vadd.f32 %v2312_v22, %v2848_v52  ;;  %2250 = vmatmul.mubr.msk.f32.gmra.mrb[14].mxu1 %vm1269_vm3, %v1249_v21 }
 0x1b6   : > { %v1234_v28 = vadd.f32 %v2313_v24, %v2848_v52  ;;  %v2225_v29 = vpop.f32.mrb[10].mxu0 }
 0x1b7   : > { %v2314_v25 = vadd.f32 %v2225_v29, %v2171_v1  ;;  %v1174_v31 = vpop.f32.mrb[11].mxu0  ;;  %v1251_v34 = vmax.f32 %v1235_v26, 0.0 }
 0x1b8   : > { %v1250_v32 = vmax.f32 %v1234_v28, 0.0  ;;  %v2315_v33 = vadd.f32 %v1174_v31, %v761_v2 }
 0x1b9   : > { %v1237_v35 = vadd.f32 %v2314_v25, %v2848_v52 }
 0x1ba   : > { %v1236_v36 = vadd.f32 %v2315_v33, %v2848_v52  ;;  %v2228_v37 = vpop.f32.mrb[12].mxu0  ;;  %2252 = vmatprep.mubr.msk.f32.mxu1 %vm1269_vm3, %v1250_v32 }
 0x1bb   : > { %v2316_v38 = vadd.f32 %v2228_v37, %v2174_v9  ;;  %v1184_v39 = vpop.f32.mrb[13].mxu0  ;;  %2253 = vmatmul.mubr.msk.f32.gmra.mrb[16].mxu1 %vm1269_vm3, %v1251_v34  ;;  %v1253_v42 = vmax.f32 %v1237_v35, 0.0 }
 0x1bc   : > { %v1252_v40 = vmax.f32 %v1236_v36, 0.0  ;;  %v2317_v41 = vadd.f32 %v1184_v39, %v771_v10 }
 0x1bd   : > { %v1239_v43 = vadd.f32 %v2316_v38, %v2848_v52 }
 0x1be   : > { %v1238_v44 = vadd.f32 %v2317_v41, %v2848_v52  ;;  %v2231_v27 = vpop.f32.mrb[14].mxu0  ;;  %2255 = vmatprep.mubr.msk.f32.mxu1 %vm1269_vm3, %v1252_v40  ;;  %v2904_v40 = vld [vmem:[%s3004_s9] ss:$0 sm:$0xff] }
 0x1bf   : > { %v2318_v45 = vadd.f32 %v2231_v27, %v2177_v17  ;;  %v1194_v30 = vpop.f32.mrb[15].mxu0  ;;  %2256 = vmatmul.mubr.msk.f32.gmra.mrb[18].mxu1 %vm1269_vm3, %v1253_v42  ;;  %v1255_v48 = vmax.f32 %v1239_v43, 0.0 }
 0x1c0   : > { %v1254_v46 = vmax.f32 %v1238_v44, 0.0  ;;  %v2319_v47 = vadd.f32 %v1194_v30, %v781_v18 }
 0x1c1   : > { %v1241_v49 = vadd.f32 %v2318_v45, %v2848_v52 }
 0x1c2   : > { %v1240_v50 = vadd.f32 %v2319_v47, %v2848_v52  ;;  %2258 = vmatprep.mubr.msk.f32.mxu1 %vm1269_vm3, %v1254_v46 }
 0x1c3   : > { %2259 = vmatmul.mubr.msk.f32.gmra.mrb[20].mxu1 %vm1269_vm3, %v1255_v48  ;;  %v1257_v53 = vmax.f32 %v1241_v49, 0.0 }
 0x1c4   : > { %v1256_v51 = vmax.f32 %v1240_v50, 0.0 }
 0x1c6   : > { %2261 = vmatprep.mubr.msk.f32.mxu1 %vm1269_vm3, %v1256_v51 }
 0x1c7   : > { %2262 = vmatmul.mubr.msk.f32.gmra.mrb[22].mxu1 %vm1269_vm3, %v1257_v53 }
 0x27c   : > { %v2242_v55 = vpop.f32.mrb[8].mxu1 }
 0x27d   : > { %v1390_v56 = vadd.f32 %v2242_v55, %v2006_v54  ;;  %v1384_v57 = vpop.f32.mrb[9].mxu1 }
 0x27e   : > { %v1385_v58 = vadd.f32 %v2006_v54, %v1384_v57 }
 0x27f   : > { %v1464_v60 = vmax.f32 %v1390_v56, 0.0 }
 0x280   : > { %v1463_v52 = vmax.f32 %v1385_v58, 0.0  ;;  %v2245_v59 = vpop.f32.mrb[10].mxu1 }
 0x281   : > { %v1400_v61 = vadd.f32 %v2245_v59, %v2006_v54  ;;  %v1394_v62 = vpop.f32.mrb[11].mxu1 }
 0x282   : > { %v1395_v63 = vadd.f32 %v2006_v54, %v1394_v62  ;;  %2268 = vmatprep.mubr.msk.f32.mxu1 %vm1488_vm9, %v1463_v52 }
 0x283   : > { %2269 = vmatmul.mubr.msk.f32.vlgmr.msra.gmra.mrb[24].mxu1 %vm1488_vm9, %v1464_v60  ;;  %v1466_v2 = vmax.f32 %v1400_v61, 0.0 }
 0x284   : > { %v1465_v0 = vmax.f32 %v1395_v63, 0.0  ;;  %v2248_v1 = vpop.f32.mrb[12].mxu1 }
 0x285   : > { %v1410_v3 = vadd.f32 %v2248_v1, %v2006_v54  ;;  %v1404_v4 = vpop.f32.mrb[13].mxu1 }
 0x286   : > { %v1405_v5 = vadd.f32 %v2006_v54, %v1404_v4  ;;  %2271 = vmatprep.mubr.msk.f32.mxu1 %vm1488_vm9, %v1465_v0 }
 0x287   : > { %2272 = vmatmul.mubr.msk.f32.gmra.mrb[26].mxu1 %vm1488_vm9, %v1466_v2  ;;  %v1468_v8 = vmax.f32 %v1410_v3, 0.0 }
 0x288   : > { %v1467_v6 = vmax.f32 %v1405_v5, 0.0  ;;  %v2251_v7 = vpop.f32.mrb[14].mxu1 }
 0x289   : > { %v1420_v9 = vadd.f32 %v2251_v7, %v2006_v54  ;;  %v1414_v10 = vpop.f32.mrb[15].mxu1 }
 0x28a   : > { %v1415_v11 = vadd.f32 %v2006_v54, %v1414_v10  ;;  %2274 = vmatprep.mubr.msk.f32.mxu1 %vm1488_vm9, %v1467_v6 }
 0x28b   : > { %2275 = vmatmul.mubr.msk.f32.gmra.mrb[28].mxu1 %vm1488_vm9, %v1468_v8  ;;  %v1470_v13 = vmax.f32 %v1420_v9, 0.0 }
 0x28c   : > { %v1469_v12 = vmax.f32 %v1415_v11, 0.0 }
 0x28e   : > { %v2254_v14 = vpop.f32.mrb[16].mxu1  ;;  %2277 = vmatprep.mubr.msk.f32.mxu1 %vm1488_vm9, %v1469_v12 }
 0x28f   : > { %v1430_v15 = vadd.f32 %v2254_v14, %v2006_v54  ;;  %v1424_v16 = vpop.f32.mrb[17].mxu1  ;;  %2278 = vmatmul.mubr.msk.f32.gmra.mrb[30].mxu1 %vm1488_vm9, %v1470_v13 }
 0x290   : > { %v1425_v17 = vadd.f32 %v2006_v54, %v1424_v16 }
 0x291   : > { %v1472_v20 = vmax.f32 %v1430_v15, 0.0 }
 0x292   : > { %v1471_v18 = vmax.f32 %v1425_v17, 0.0  ;;  %v2257_v19 = vpop.f32.mrb[18].mxu1 }
 0x293   : > { %v1440_v21 = vadd.f32 %v2257_v19, %v2006_v54  ;;  %v1434_v22 = vpop.f32.mrb[19].mxu1 }
 0x294   : > { %v1435_v23 = vadd.f32 %v2006_v54, %v1434_v22  ;;  %2280 = vmatprep.mubr.msk.f32.mxu1 %vm1488_vm9, %v1471_v18 }
 0x295   : > { %2281 = vmatmul.mubr.msk.f32.gmra.mrb[32].mxu1 %vm1488_vm9, %v1472_v20  ;;  %v1474_v28 = vmax.f32 %v1440_v21, 0.0 }
 0x296   : > { %v1473_v24 = vmax.f32 %v1435_v23, 0.0  ;;  %v2260_v26 = vpop.f32.mrb[20].mxu1 }
 0x297   : > { %v1450_v29 = vadd.f32 %v2260_v26, %v2006_v54  ;;  %v1444_v25 = vpop.f32.mrb[21].mxu1 }
 0x298   : > { %v1445_v31 = vadd.f32 %v2006_v54, %v1444_v25  ;;  %2283 = vmatprep.mubr.msk.f32.mxu1 %vm1488_vm9, %v1473_v24 }
 0x299   : > { %2284 = vmatmul.mubr.msk.f32.gmra.mrb[34].mxu1 %vm1488_vm9, %v1474_v28  ;;  %v1476_v34 = vmax.f32 %v1450_v29, 0.0 }
 0x29a   : > { %v1475_v32 = vmax.f32 %v1445_v31, 0.0  ;;  %v2263_v33 = vpop.f32.mrb[22].mxu1 }
 0x29b   : > { %v1460_v35 = vadd.f32 %v2263_v33, %v2006_v54  ;;  %v1454_v36 = vpop.f32.mrb[23].mxu1 }
 0x29c   : > { %v1455_v37 = vadd.f32 %v2006_v54, %v1454_v36  ;;  %2286 = vmatprep.mubr.msk.f32.mxu1 %vm1488_vm9, %v1475_v32 }
 0x29d   : > { %2287 = vmatmul.mubr.msk.f32.gmra.mrb[36].mxu1 %vm1488_vm9, %v1476_v34  ;;  %v1478_v39 = vmax.f32 %v1460_v35, 0.0 }
 0x29e   : > { %v1477_v38 = vmax.f32 %v1455_v37, 0.0 }
 0x2a0   : > { %2289 = vmatprep.mubr.msk.f32.mxu1 %vm1488_vm9, %v1477_v38 }
 0x2a1   : > { %2290 = vmatmul.mubr.msk.f32.gmra.mrb[38].mxu1 %vm1488_vm9, %v1478_v39 }
 0x356   : > { %v2270_v41 = vpop.f32.mrb[24].mxu1 }
 0x357   : > { %v1609_v42 = vadd.f32 %v2270_v41, %v2904_v40  ;;  %v1603_v43 = vpop.f32.mrb[25].mxu1 }
 0x358   : > { %v1604_v44 = vadd.f32 %v2904_v40, %v1603_v43 }
 0x359   : > { %v2041_v27 = vmul.f32 -1.442695, %v1609_v42 }
 0x35a   : > { %v2040_v45 = vmul.f32 -1.442695, %v1604_v44  ;;  %v2273_v30 = vpop.f32.mrb[26].mxu1 }
 0x35b   : > { %2395 = vpow2.f32 %v2041_v27  ;;  %v1619_v46 = vadd.f32 %v2273_v30, %v2904_v40  ;;  %v1613_v47 = vpop.f32.mrb[27].mxu1 }
 0x35c   : > { %2397 = vpow2.f32 %v2040_v45  ;;  %v1614_v48 = vadd.f32 %v2904_v40, %v1613_v47 }
 0x35d   : > { %v2043_v49 = vmul.f32 -1.442695, %v1619_v46 }
 0x35e   : > { %v2042_v50 = vmul.f32 -1.442695, %v1614_v48  ;;  %v2276_v51 = vpop.f32.mrb[28].mxu1 }
 0x35f   : > { %2399 = vpow2.f32 %v2043_v49  ;;  %v1629_v53 = vadd.f32 %v2276_v51, %v2904_v40  ;;  %v1623_v54 = vpop.f32.mrb[29].mxu1 }
 0x360   : > { %2401 = vpow2.f32 %v2042_v50  ;;  %v1624_v55 = vadd.f32 %v2904_v40, %v1623_v54 }
 0x361   : > { %v2045_v56 = vmul.f32 -1.442695, %v1629_v53 }
 0x362   : > { %v2044_v57 = vmul.f32 -1.442695, %v1624_v55  ;;  %v2279_v58 = vpop.f32.mrb[30].mxu1 }
 0x363   : > { %2403 = vpow2.f32 %v2045_v56  ;;  %v1639_v52 = vadd.f32 %v2279_v58, %v2904_v40  ;;  %v1633_v59 = vpop.f32.mrb[31].mxu1 }
 0x364   : > { %2405 = vpow2.f32 %v2044_v57  ;;  %v1634_v60 = vadd.f32 %v2904_v40, %v1633_v59 }
 0x365   : > { %v2396_v61 = vpop.eup %2395  ;;  %v2047_v62 = vmul.f32 -1.442695, %v1639_v52 }
 0x366   : > { %v2398_v63 = vpop.eup %2397  ;;  %v1731_v0 = vadd.f32 1.0, %v2396_v61  ;;  %v2046_v1 = vmul.f32 -1.442695, %v1634_v60 }
 0x367   : > { %v1730_v2 = vadd.f32 1.0, %v2398_v63  ;;  %2407 = vpow2.f32 %v2047_v62 }
 0x368   : > { %2409 = vrcp.f32 %v1731_v0  ;;  %v2282_v3 = vpop.f32.mrb[32].mxu1 }
 0x369   : > { %v2400_v4 = vpop.eup %2399  ;;  %2411 = vrcp.f32 %v1730_v2  ;;  %v1649_v5 = vadd.f32 %v2282_v3, %v2904_v40  ;;  %v1643_v6 = vpop.f32.mrb[33].mxu1 }
 0x36a   : > { %v2402_v7 = vpop.eup %2401  ;;  %v1733_v8 = vadd.f32 1.0, %v2400_v4  ;;  %2413 = vpow2.f32 %v2046_v1  ;;  %v1644_v9 = vadd.f32 %v2904_v40, %v1643_v6 }
 0x36b   : > { %v1732_v10 = vadd.f32 1.0, %v2402_v7  ;;  %v2049_v11 = vmul.f32 -1.442695, %v1649_v5 }
 0x36c   : > { %2415 = vrcp.f32 %v1733_v8  ;;  %v2048_v12 = vmul.f32 -1.442695, %v1644_v9  ;;  %v2285_v13 = vpop.f32.mrb[34].mxu1 }
 0x36d   : > { %v2404_v14 = vpop.eup %2403  ;;  %2417 = vrcp.f32 %v1732_v10  ;;  %v1659_v15 = vadd.f32 %v2285_v13, %v2904_v40  ;;  %v1653_v16 = vpop.f32.mrb[35].mxu1 }
 0x36e   : > { %v2406_v17 = vpop.eup %2405  ;;  %v1735_v18 = vadd.f32 1.0, %v2404_v14  ;;  %2419 = vpow2.f32 %v2049_v11  ;;  %v1654_v19 = vadd.f32 %v2904_v40, %v1653_v16 }
 0x36f   : > { %v1734_v20 = vadd.f32 1.0, %v2406_v17  ;;  %2421 = vpow2.f32 %v2048_v12  ;;  %v2051_v21 = vmul.f32 -1.442695, %v1659_v15 }
 0x370   : > { %2423 = vrcp.f32 %v1735_v18  ;;  %v2050_v22 = vmul.f32 -1.442695, %v1654_v19  ;;  %v2288_v23 = vpop.f32.mrb[36].mxu1 }
 0x371   : > { %v2408_v24 = vpop.eup %2407  ;;  %2425 = vrcp.f32 %v1734_v20  ;;  %v1669_v26 = vadd.f32 %v2288_v23, %v2904_v40  ;;  %v1663_v28 = vpop.f32.mrb[37].mxu1 }
 0x372   : > { %v2410_v29 = vpop.eup %2409  ;;  %v1737_v25 = vadd.f32 1.0, %v2408_v24  ;;  %2427 = vpow2.f32 %v2051_v21  ;;  %v1664_v31 = vadd.f32 %v2904_v40, %v1663_v28 }
 0x373   : > { %v2412_v32 = vpop.eup %2411  ;;  %v1779_v33 = vmul.f32 5.0, %v2410_v29  ;;  %2429 = vpow2.f32 %v2050_v22  ;;  %v2053_v34 = vmul.f32 -1.442695, %v1669_v26 }
 0x374   : > { %v2414_v35 = vpop.eup %2413  ;;  %v1778_v36 = vmul.f32 5.0, %v2412_v32  ;;  %2431 = vrcp.f32 %v1737_v25  ;;  %v2052_v37 = vmul.f32 -1.442695, %v1664_v31  ;;  %v2291_v38 = vpop.f32.mrb[38].mxu1 }
 0x375   : > { %1811 = vst [vmem:[%s2923_s11 + $0x8] sm:$0xff] %v1779_v33  ;;  %v1736_v39 = vadd.f32 1.0, %v2414_v35  ;;  %2433 = vpow2.f32 %v2053_v34  ;;  %v1679_v41 = vadd.f32 %v2291_v38, %v2904_v40  ;;  %v1673_v42 = vpop.f32.mrb[39].mxu1 }
 0x376   : > { %v2416_v43 = vpop.eup %2415  ;;  %1810 = vst [vmem:[%s2923_s11] sm:$0xff] %v1778_v36  ;;  %2435 = vpow2.f32 %v2052_v37  ;;  %v1674_v44 = vadd.f32 %v2904_v40, %v1673_v42 }
 0x377   : > { %v2418_v27 = vpop.eup %2417  ;;  %v1781_v45 = vmul.f32 5.0, %v2416_v43  ;;  %2437 = vrcp.f32 %v1736_v39  ;;  %v2055_v30 = vmul.f32 -1.442695, %v1679_v41 }
 0x378   : > { %v2420_v46 = vpop.eup %2419  ;;  %v1780_v47 = vmul.f32 5.0, %v2418_v27  ;;  %v2054_v48 = vmul.f32 -1.442695, %v1674_v44 }
 0x379   : > { %v2422_v49 = vpop.eup %2421  ;;  %1813 = vst [vmem:[%s2923_s11 + $0x18] sm:$0xff] %v1781_v45  ;;  %v1739_v50 = vadd.f32 1.0, %v2420_v46  ;;  %2439 = vpow2.f32 %v2055_v30 }
 0x37a   : > { %v2424_v51 = vpop.eup %2423  ;;  %1812 = vst [vmem:[%s2923_s11 + $0x10] sm:$0xff] %v1780_v47  ;;  %v1738_v53 = vadd.f32 1.0, %v2422_v49  ;;  %2441 = vpow2.f32 %v2054_v48 }
 0x37b   : > { %v2426_v54 = vpop.eup %2425  ;;  %v1783_v55 = vmul.f32 5.0, %v2424_v51  ;;  %2443 = vrcp.f32 %v1739_v50 }
 0x37c   : > { %v2428_v40 = vpop.eup %2427  ;;  %v1782_v56 = vmul.f32 5.0, %v2426_v54  ;;  %2445 = vrcp.f32 %v1738_v53 }
 0x37d   : > { %v2430_v57 = vpop.eup %2429  ;;  %1815 = vst [vmem:[%s2923_s11 + $0x28] sm:$0xff] %v1783_v55  ;;  %v1741_v58 = vadd.f32 1.0, %v2428_v40 }
 0x37e   : > { %v2432_v52 = vpop.eup %2431  ;;  %1814 = vst [vmem:[%s2923_s11 + $0x20] sm:$0xff] %v1782_v56  ;;  %v1740_v59 = vadd.f32 1.0, %v2430_v57 }
 0x37f   : > { %v2434_v60 = vpop.eup %2433  ;;  %v1785_v61 = vmul.f32 5.0, %v2432_v52  ;;  %2447 = vrcp.f32 %v1741_v58 }
 0x380   : > { %v2436_v62 = vpop.eup %2435  ;;  %2449 = vrcp.f32 %v1740_v59  ;;  %v1743_v63 = vadd.f32 1.0, %v2434_v60 }
 0x381   : > { %v2438_v0 = vpop.eup %2437  ;;  %1817 = vst [vmem:[%s2923_s11 + $0x38] sm:$0xff] %v1785_v61  ;;  %v1742_v1 = vadd.f32 1.0, %v2436_v62 }
 0x382   : > { %v1784_v2 = vmul.f32 5.0, %v2438_v0  ;;  %2451 = vrcp.f32 %v1743_v63 }
 0x383   : > { %v2440_v3 = vpop.eup %2439  ;;  %2453 = vrcp.f32 %v1742_v1 }
 0x384   : > { %v2442_v4 = vpop.eup %2441  ;;  %1816 = vst [vmem:[%s2923_s11 + $0x30] sm:$0xff] %v1784_v2  ;;  %v1745_v5 = vadd.f32 1.0, %v2440_v3 }
 0x385   : > { %v2444_v6 = vpop.eup %2443  ;;  %v1744_v7 = vadd.f32 1.0, %v2442_v4 }
 0x386   : > { %v2446_v8 = vpop.eup %2445  ;;  %v1787_v9 = vmul.f32 5.0, %v2444_v6  ;;  %2455 = vrcp.f32 %v1745_v5 }
 0x387   : > { %v1786_v10 = vmul.f32 5.0, %v2446_v8  ;;  %2457 = vrcp.f32 %v1744_v7 }
 0x388   : > { %1819 = vst [vmem:[%s2923_s11 + $0x48] sm:$0xff] %v1787_v9 }
 0x389   : > { %v2448_v11 = vpop.eup %2447  ;;  %1818 = vst [vmem:[%s2923_s11 + $0x40] sm:$0xff] %v1786_v10 }
 0x38a   : > { %v2450_v12 = vpop.eup %2449  ;;  %v1789_v13 = vmul.f32 5.0, %v2448_v11 }
 0x38b   : > { %v1788_v14 = vmul.f32 5.0, %v2450_v12 }
 0x38c   : > { %v2452_v15 = vpop.eup %2451  ;;  %1821 = vst [vmem:[%s2923_s11 + $0x58] sm:$0xff] %v1789_v13 }
 0x38d   : > { %v2454_v16 = vpop.eup %2453  ;;  %1820 = vst [vmem:[%s2923_s11 + $0x50] sm:$0xff] %v1788_v14  ;;  %v1791_v17 = vmul.f32 5.0, %v2452_v15 }
 0x38e   : > { %v1790_v18 = vmul.f32 5.0, %v2454_v16 }
 0x38f   : > { %1823 = vst [vmem:[%s2923_s11 + $0x68] sm:$0xff] %v1791_v17 }
 0x390   : > { %v2456_v19 = vpop.eup %2455  ;;  %1822 = vst [vmem:[%s2923_s11 + $0x60] sm:$0xff] %v1790_v18 }
 0x391   : > { %v2458_v20 = vpop.eup %2457  ;;  %v1793_v21 = vmul.f32 5.0, %v2456_v19 }
 0x392   : > { %v1792_v22 = vmul.f32 5.0, %v2458_v20 }
 0x393   : > { %1825 = vst [vmem:[%s2923_s11 + $0x78] sm:$0xff] %v1793_v21 }
 0x394   : > { %1824 = vst [vmem:[%s2923_s11 + $0x70] sm:$0xff] %v1792_v22 }
 0x395   : > { %2472 = shalt.err (!%p2469_p3)
}
 0x396   : > { %s2473_s28 = scalar_lea.hbm %s2946_s21, 2048  ;;  %s2477_s18 = scalar_lea.hbm %s3005_s10, 4096 }
 0x397   : > { %p2474_p4 = scmp.ne.s32.totalorder %s2946_s21, %s2473_s28  ;;  %p2478_p9 = scmp.lt.u32.totalorder %s2946_s21, %s3005_s10 }
 0x398   : > { %p2479_p10 = scmp.lt.u32.totalorder %s2477_s18, %s2473_s28  ;;  %p2481_p12 = scmp.lt.u32.totalorder %s2473_s28, %s2946_s21 }
 0x399   : > { %p2475_p7 = pnand %p2474_p4, %p2623_p5 }
 0x39a   : > { %p2480_p11 = por %p2479_p10, %p2478_p9 }
 0x39b   : > { %p2476_p8 = pneg %p2475_p7 }
 0x39c   : > { %p2482_p13 = por %p2481_p12, %p2480_p11 }
 0x39e   : > { %p2483_p0 = pnand %p2482_p13, %p2476_p8 }
 0x3a0   : > { %2486 = shalt.err (!%p2483_p0)
}
 0x3a1   : > { %s2528_s25 = smov 128   ;;  %s2529_s27 = smov 8  }
 0x3a2   : > { %2344 = dma.vmem_to_hbm [thread:$0]  (%p2623_p5), %s2948_s12, 2048, %s2946_s21, %s2954_s17, %s2528_s25, %s2528_s25, %s2529_s27  }
 0x3a3 PF: > { %p2350_p1 = scmp.ge.s32.totalorder %s2521_s16, 2  ;;  %s1855_s30 = sand.u32 1, %s2509_s13  }
 0x3a4   : > { %s1856_s28 = scalar_lea.sflag [#allocation3], %s1855_s30 }
 0x3a5   : > { %p2347_p2 = pnand %p2350_p1, %p2627_p6 }
 0x3a7   : > { %2504 = dma.done.wait (!%p2347_p2), %s1856_s28, 2048  }
 0x3a8   : > { %2506 = vsyncadd (!%p2347_p2), %s1856_s28, 4294965248  ;;  %p20_p3 = scmp.ge.s32.totalorder %s2610_s19, 4   ;;  %s3010_s13 = smov %s2513_s14 }
 0x3a9   : > { %s3011_s14 = smov %s2517_s15  ;;  %s3012_s15 = smov %s2621_s22 }
 0x3aa   : > { %s3013_s16 = smov %s2610_s19  ;;  %22 = sbr.rel (!%p20_p3) target bundleno = 3 (0x3), region = 98 }
 0x3b1   :  { %1861 = vsyncpa [#allocation3], 1 }
 0x3b2   :  { %1863 = vsyncpa [#allocation3 + $0x1], 1 }

</bundles_post_ra>
